<compile_context>
chip_gen: v7x
topology: tpu7x:2x2x1
jax: 0.10.0
libtpu: 0.0.40
codegen_flags: <defaults>
</compile_context>

<pallas_src>
import functools

import jax
import jax.numpy as jnp
from jax.experimental import pallas as pl
from jax.experimental.pallas import tpu as pltpu

EPS = 1e-5
LANE = 128   # TPU lane width: output-channel dim is padded to a multiple of this


def _round_up(x, m):
    return (x + m - 1) // m * m


def _pick_tm_max():
    """Generation-aware row tile.

    512 rows is past the ~512-row HBM-roofline knee and, double-buffered
    (bf16 input tile + out/residual tiles + weight slab + f32 accumulator),
    fits v7x's 64 MiB VMEM for K up to ~1k.  With 128 MiB VMEM (v5e/v6e) we
    use 1024 rows for better DMA efficiency.
    """
    try:
        vmem = pltpu.get_tpu_info().vmem_capacity_bytes
    except Exception:
        return 512
    return 1024 if vmem >= 128 * 1024 * 1024 else 512


TM_MAX = _pick_tm_max()
TK_MAX = 1024   # above this, the contraction dim is tiled + accumulated in VMEM


# ----------------------------------------------------------------------------
# Pallas kernel: (TM, TK) x (TK, Cp) MXU matmul, accumulated over the K grid
# axis in an f32 VMEM scratch, + bias (+ residual) (+ ReLU) epilogue.
# ----------------------------------------------------------------------------
def _fused_conv_kernel(has_residual, apply_relu, *refs):
    if has_residual:
        x_ref, w_ref, b_ref, r_ref, o_ref, acc_ref = refs
    else:
        x_ref, w_ref, b_ref, o_ref, acc_ref = refs

    k = pl.program_id(1)

    @pl.when(k == 0)
    def _():
        acc_ref[...] = jnp.zeros_like(acc_ref)

    acc_ref[...] += jnp.dot(x_ref[...], w_ref[...],
                            preferred_element_type=jnp.float32)

    @pl.when(k == pl.num_programs(1) - 1)
    def _():
        acc = acc_ref[...] + b_ref[...]          # folded BatchNorm bias (f32)
        if has_residual:
            acc = acc + r_ref[...].astype(jnp.float32)   # residual add (f32)
        if apply_relu:
            acc = jnp.maximum(acc, 0.0)
        o_ref[...] = acc.astype(o_ref.dtype)


def _pad2d(a, rows, cols):
    pr, pc = rows - a.shape[0], cols - a.shape[1]
    if pr == 0 and pc == 0:
        return a
    return jnp.pad(a, ((0, pr), (0, pc)))


def fused_conv_matmul(x2d, w2d, scale, bias, residual=None, relu=True,
                      out_dtype=jnp.float32):
    """Streaming, tiled conv-as-matmul.

    x2d:      (M, K)   im2col patches (rows = N*Ho*Wo output positions)
    w2d:      (K, Cout) f32 weights;  scale/bias: (Cout,) folded BatchNorm
    residual: optional (M, Cout) array, added (in f32) before the ReLU
    returns   (M, Cout) out_dtype
    """
    M, K = x2d.shape
    Kw, Cout = w2d.shape
    assert K == Kw

    # Fold the BN scale into the weights -> bias-only epilogue in the kernel.
    w_folded = (w2d * scale[None, :]).astype(jnp.bfloat16)
    x_bf16 = x2d.astype(jnp.bfloat16)

    # Lane-dense output (unmasked stores, full MXU N width) + row/K tiling.
    Cp = _round_up(Cout, LANE)
    TM = min(TM_MAX, _round_up(M, 8))
    Mp = _round_up(M, TM)
    if K <= TK_MAX:
        TK = K                      # single K step, full-extent block
    else:
        TK = 512                    # multiple of (8, 128) -> legal tiled block
    Kp = _round_up(K, TK)
    grid = (Mp // TM, Kp // TK)

    xp = _pad2d(x_bf16, Mp, Kp)
    wp = _pad2d(w_folded, Kp, Cp)
    bp = _pad2d(bias.astype(jnp.float32).reshape(1, Cout), 1, Cp)

    inputs = [xp, wp, bp]
    in_specs = [
        pl.BlockSpec((TM, TK), lambda i, k: (i, k)),   # streamed row/K tiles
        pl.BlockSpec((TK, Cp), lambda i, k: (k, 0)),   # weight K-slab
        pl.BlockSpec((1, Cp), lambda i, k: (0, 0)),    # bias row, VMEM-resident
    ]
    res_bytes = 0
    if residual is not None:
        rp = _pad2d(residual, Mp, Cp)
        res_bytes = rp.dtype.itemsize
        inputs.append(rp)
        in_specs.append(pl.BlockSpec((TM, Cp), lambda i, k: (i, 0)))

    out_bytes = jnp.dtype(out_dtype).itemsize
    tile_bytes = (2 * TM * TK * 2                 # double-buffered bf16 x tiles
                  + 2 * TK * Cp * 2               # double-buffered bf16 w slabs
                  + 2 * TM * Cp * out_bytes       # double-buffered out tiles
                  + 2 * TM * Cp * res_bytes       # double-buffered residual
                  + TM * Cp * 4                   # f32 accumulator scratch
                  + 2 * Cp * 4)                   # bias
    vmem_limit = int(min(max(2 * tile_bytes, 8 << 20), 48 << 20))

    cost = pl.CostEstimate(
        flops=2 * Mp * Kp * Cp,
        transcendentals=0,
        bytes_accessed=(xp.size * 2 + wp.size * 2 + bp.size * 4
                        + (Mp * Cp * res_bytes if residual is not None else 0)
                        + Mp * Cp * out_bytes),
    )

    kernel = functools.partial(_fused_conv_kernel, residual is not None, relu)
    out = pl.pallas_call(
        kernel,
        out_shape=jax.ShapeDtypeStruct((Mp, Cp), out_dtype),
        grid=grid,
        in_specs=in_specs,
        out_specs=pl.BlockSpec((TM, Cp), lambda i, k: (i, 0)),
        scratch_shapes=[pltpu.VMEM((TM, Cp), jnp.float32)],
        compiler_params=pltpu.CompilerParams(
            # row tiles shard over v7x's 2 TCs; K is the (last) reduction axis
            dimension_semantics=("parallel", "arbitrary"),
            vmem_limit_bytes=vmem_limit),
        cost_estimate=cost,
    )(*inputs)
    return out[:M, :Cout]


# ----------------------------------------------------------------------------
# Glue: im2col patch extraction, weight / BN reshaping (plain JAX, under jit)
# ----------------------------------------------------------------------------
# TODO(synk): im2col still materializes a 9x-wide (bf16) patch tensor in HBM;
# for large production shapes the 9-tap accumulation should move fully inside
# the kernel via halo'd spatial blocks + manual DMA.
def conv3x3_im2col(x_nhwc, stride):
    N, H, W, C = x_nhwc.shape
    xp = jnp.pad(x_nhwc.astype(jnp.bfloat16), ((0, 0), (1, 1), (1, 1), (0, 0)))
    Ho = (H + 2 - 3) // stride + 1
    Wo = (W + 2 - 3) // stride + 1
    cols = []
    for ky in range(3):
        for kx in range(3):
            sl = xp[:, ky:ky + stride * (Ho - 1) + 1:stride,
                       kx:kx + stride * (Wo - 1) + 1:stride, :]
            cols.append(sl)
    patches = jnp.concatenate(cols, axis=-1)     # (N, Ho, Wo, 9*C), order (ky,kx,cin)
    return patches.reshape(N * Ho * Wo, 9 * C), (N, Ho, Wo)


def w3x3_to_mat(w):   # torch layout (Cout, Cin, 3, 3) -> (9*Cin, Cout)
    return jnp.transpose(w, (2, 3, 1, 0)).reshape(-1, w.shape[0])


def w1x1_to_mat(w):   # (Cout, Cin, 1, 1) -> (Cin, Cout)
    return jnp.transpose(w, (2, 3, 1, 0)).reshape(w.shape[1], w.shape[0])


def fold_bn(bn):
    scale = bn["gamma"] / jnp.sqrt(bn["var"] + EPS)
    bias = bn["beta"] - bn["mean"] * scale
    return scale, bias


# ----------------------------------------------------------------------------
# ResidualBlock / ResNetLayer forward (all matmul work runs in the Pallas kernel)
# ----------------------------------------------------------------------------
def residual_block_forward(x_nhwc, p, stride):
    N, H, W, Cin = x_nhwc.shape
    Cout = p["conv1_w"].shape[0]

    # conv1 (3x3, stride) -> BN -> ReLU.  The result is only ever consumed as
    # a bf16 MXU operand by conv2, so write it back as bf16 (halves HBM traffic).
    patches1, (_, Ho, Wo) = conv3x3_im2col(x_nhwc, stride)
    s1, b1 = fold_bn(p["bn1"])
    y1 = fused_conv_matmul(patches1, w3x3_to_mat(p["conv1_w"]), s1, b1,
                           relu=True, out_dtype=jnp.bfloat16)
    y1 = y1.reshape(N, Ho, Wo, Cout)

    # shortcut: 1x1 conv (stride) + BN, or identity (passed straight through).
    # Residuals stay f32 so the final add happens at full precision.
    if "sc_w" in p:
        x_ds = x_nhwc[:, ::stride, ::stride, :]
        ssc, bsc = fold_bn(p["sc_bn"])
        shortcut = fused_conv_matmul(
            x_ds.reshape(N * Ho * Wo, Cin), w1x1_to_mat(p["sc_w"]),
            ssc, bsc, relu=False, out_dtype=jnp.float32)
    else:
        shortcut = x_nhwc.reshape(N * H * W, Cin)

    # conv2 (3x3, stride 1) -> BN -> + shortcut -> ReLU  (fused in the epilogue)
    patches2, _ = conv3x3_im2col(y1, 1)
    s2, b2 = fold_bn(p["bn2"])
    out = fused_conv_matmul(patches2, w3x3_to_mat(p["conv2_w"]), s2, b2,
                            residual=shortcut, relu=True, out_dtype=jnp.float32)
    return out.reshape(N, Ho, Wo, Cout)


def resnet_layer_forward(x_nchw, params, *, stride1):
    x = jnp.transpose(x_nchw, (0, 2, 3, 1))                       # NCHW -> NHWC
    x = residual_block_forward(x, params["block1"], stride1)
    x = residual_block_forward(x, params["block2"], 1)
    return jnp.transpose(x, (0, 3, 1, 2))                         # NHWC -> NCHW


# ----------------------------------------------------------------------------
# Deterministic parameter initialization
# ----------------------------------------------------------------------------
def init_bn(key, c):
    k1, k2, k3, k4 = jax.random.split(key, 4)
    return dict(
        gamma=jax.random.uniform(k1, (c,), jnp.float32, 0.5, 1.5),
        beta=0.1 * jax.random.normal(k2, (c,), jnp.float32),
        mean=0.1 * jax.random.normal(k3, (c,), jnp.float32),
        var=jax.random.uniform(k4, (c,), jnp.float32, 0.5, 1.5),
    )


def init_residual_block(key, cin, cout, downsample):
    ks = jax.random.split(key, 6)
    p = dict(
        conv1_w=0.1 * jax.random.normal(ks[0], (cout, cin, 3, 3), jnp.float32),
        bn1=init_bn(ks[1], cout),
        conv2_w=0.1 * jax.random.normal(ks[2], (cout, cout, 3, 3), jnp.float32),
        bn2=init_bn(ks[3], cout),
    )
    if downsample:
        p["sc_w"] = 0.1 * jax.random.normal(ks[4], (cout, cin, 1, 1), jnp.float32)
        p["sc_bn"] = init_bn(ks[5], cout)
    return p


def init_resnet_layer(key, in_channels, out_channels):
    k1, k2 = jax.random.split(key)
    downsample = in_channels != out_channels
    stride1 = 2 if downsample else 1
    params = dict(
        block1=init_residual_block(k1, in_channels, out_channels, downsample),
        block2=init_residual_block(k2, out_channels, out_channels, False),
    )
    return params, stride1


# ----------------------------------------------------------------------------
# Pure-JAX references (sanity checks only)
# ----------------------------------------------------------------------------
def _ref_conv_f32(x, w, stride, pad):
    return jax.lax.conv_general_dilated(
        x, jnp.transpose(w, (2, 3, 1, 0)), (stride, stride),
        ((pad, pad), (pad, pad)), dimension_numbers=("NHWC", "HWIO", "NHWC"))


def _ref_bn(x, bn):
    return bn["gamma"] * (x - bn["mean"]) / jnp.sqrt(bn["var"] + EPS) + bn["beta"]


def _ref_block_f32(x, p, stride):
    y = jax.nn.relu(_ref_bn(_ref_conv_f32(x, p["conv1_w"], stride, 1), p["bn1"]))
    y = _ref_bn(_ref_conv_f32(y, p["conv2_w"], 1, 1), p["bn2"])
    sc = _ref_bn(_ref_conv_f32(x, p["sc_w"], stride, 0), p["sc_bn"]) if "sc_w" in p else x
    return jax.nn.relu(y + sc)


def _ref_layer_f32(x_nchw, params, stride1):
    x = jnp.transpose(x_nchw, (0, 2, 3, 1))
    x = _ref_block_f32(x, params["block1"], stride1)
    x = _ref_block_f32(x, params["block2"], 1)
    return jnp.transpose(x, (0, 3, 1, 2))


def _ref_conv_folded_bf16(x, w_oihw, scale, stride, pad):
    """Mirrors the kernel precision: bf16 activations x bf16 scale-folded
    weights on the MXU, f32 accumulation."""
    lhs = x.astype(jnp.bfloat16)
    rhs = jnp.transpose(w_oihw * scale[:, None, None, None],
                        (2, 3, 1, 0)).astype(jnp.bfloat16)
    return jax.lax.conv_general_dilated(
        lhs, rhs, (stride, stride), ((pad, pad), (pad, pad)),
        dimension_numbers=("NHWC", "HWIO", "NHWC"),
        preferred_element_type=jnp.float32)


def _ref_block_matched(x, p, stride):
    s1, b1 = fold_bn(p["bn1"])
    y = jax.nn.relu(_ref_conv_folded_bf16(x, p["conv1_w"], s1, stride, 1) + b1)
    s2, b2 = fold_bn(p["bn2"])
    y2 = _ref_conv_folded_bf16(y, p["conv2_w"], s2, 1, 1) + b2
    if "sc_w" in p:
        ss, bs = fold_bn(p["sc_bn"])
        sc = _ref_conv_folded_bf16(x, p["sc_w"], ss, stride, 0) + bs
    else:
        sc = x
    return jax.nn.relu(y2 + sc)


def _ref_layer_matched(x_nchw, params, stride1):
    x = jnp.transpose(x_nchw, (0, 2, 3, 1))
    x = _ref_block_matched(x, params["block1"], stride1)
    x = _ref_block_matched(x, params["block2"], 1)
    return jnp.transpose(x, (0, 3, 1, 2))


# ----------------------------------------------------------------------------
if __name__ == "__main__":
    key = jax.random.PRNGKey(0)
    k_x, k_p = jax.random.split(key)

    in_channels, out_channels = 4, 8
    x = jax.random.normal(k_x, (2, in_channels, 16, 16), jnp.float32)   # NCHW

    params, stride1 = init_resnet_layer(k_p, in_channels, out_channels)

    fwd = jax.jit(functools.partial(resnet_layer_forward, stride1=stride1))
    out = jax.block_until_ready(fwd(x, params))
    assert out.shape == (2, out_channels, 8, 8), out.shape

    # Tight check vs a reference that mirrors the kernel's bf16-matmul / f32-
    # epilogue precision, plus a loose sanity check vs the exact f32 math.
    ref_m = jax.block_until_ready(_ref_layer_matched(x, params, stride1))
    assert jnp.allclose(out, ref_m, rtol=1e-2, atol=1e-2), \
        float(jnp.max(jnp.abs(out - ref_m)))

    ref_f = jax.block_until_ready(_ref_layer_f32(x, params, stride1))
    rel = float(jnp.max(jnp.abs(out - ref_f)) / jnp.max(jnp.abs(ref_f)))
    assert rel < 0.1, rel

    print("KERNEL_OK")
</pallas_src>

<mosaic_0001>
module attributes {stable_mosaic.version = 11 : i64} {
  func.func @_fused_conv_kernel(%arg0: i32, %arg1: i32, %arg2: memref<128x36xbf16, #tpu.memory_space<vmem>>, %arg3: memref<36x128xbf16, #tpu.memory_space<vmem>>, %arg4: memref<1x128xf32, #tpu.memory_space<vmem>>, %arg5: memref<128x128xbf16, #tpu.memory_space<vmem>>, %arg6: memref<128x128xf32, #tpu.memory_space<vmem>>) attributes {dimension_semantics = [#tpu.dimension_semantics<parallel>, #tpu.dimension_semantics<arbitrary>], iteration_bounds = array<i64: 1, 1>, scalar_prefetch = 0 : i64, scratch_operands = 1 : i64, tpu.core_type = #tpu.core_type<tc>, window_params = [{transform_indices = @transform_0, window_bounds = array<i64: 128, 36>}, {transform_indices = @transform_1, window_bounds = array<i64: 36, 128>}, {pipeline_mode = #tpu.pipeline_mode<synchronous>, transform_indices = @transform_2, window_bounds = array<i64: 1, 128>}, {transform_indices = @transform_3, window_bounds = array<i64: 128, 128>}]} {
    %c0_i32 = arith.constant 0 : i32
    %0 = arith.cmpi eq, %arg1, %c0_i32 : i32
    %1 = arith.extui %0 : i1 to i32
    %c0_i32_0 = arith.constant 0 : i32
    %2 = arith.cmpi ne, %1, %c0_i32_0 : i32
    scf.if %2 {
      %cst_10 = arith.constant 0.000000e+00 : f32
      %12 = vector.broadcast %cst_10 : f32 to vector<128x128xf32>
      %c0_11 = arith.constant 0 : index
      %c0_12 = arith.constant 0 : index
      %13 = vector.load %arg6[%c0_11, %c0_12] : memref<128x128xf32, #tpu.memory_space<vmem>>, vector<128x128xf32>
      tpu.vector_store %arg6[%c0_11, %c0_12], %12 {strides = array<i32>} : memref<128x128xf32, #tpu.memory_space<vmem>>, vector<128x128xf32>,
    } else {
    }
    %c0 = arith.constant 0 : index
    %c0_1 = arith.constant 0 : index
    %3 = vector.load %arg6[%c0, %c0_1] : memref<128x128xf32, #tpu.memory_space<vmem>>, vector<128x128xf32>
    %c0_2 = arith.constant 0 : index
    %c0_3 = arith.constant 0 : index
    %4 = vector.load %arg2[%c0_2, %c0_3] : memref<128x36xbf16, #tpu.memory_space<vmem>>, vector<128x36xbf16>
    %c0_4 = arith.constant 0 : index
    %c0_5 = arith.constant 0 : index
    %5 = vector.load %arg3[%c0_4, %c0_5] : memref<36x128xbf16, #tpu.memory_space<vmem>>, vector<36x128xbf16>
    %cst = arith.constant dense<0.000000e+00> : vector<128x128xf32>
    %6 = tpu.matmul %4, %5, %cst {dimension_numbers = #tpu.dot_dimension_numbers<[1], [0], [0], [1], [0, 0, 1, 1], [], []>} : vector<128x36xbf16>, vector<36x128xbf16>, vector<128x128xf32> -> vector<128x128xf32>
    %7 = arith.addf %3, %6 : vector<128x128xf32>
    %c0_6 = arith.constant 0 : index
    %c0_7 = arith.constant 0 : index
    %8 = vector.load %arg6[%c0_6, %c0_7] : memref<128x128xf32, #tpu.memory_space<vmem>>, vector<128x128xf32>
    tpu.vector_store %arg6[%c0_6, %c0_7], %7 {strides = array<i32>} : memref<128x128xf32, #tpu.memory_space<vmem>>, vector<128x128xf32>,
    %c0_i32_8 = arith.constant 0 : i32
    %9 = arith.cmpi eq, %arg1, %c0_i32_8 : i32
    %10 = arith.extui %9 : i1 to i32
    %c0_i32_9 = arith.constant 0 : i32
    %11 = arith.cmpi ne, %10, %c0_i32_9 : i32
    scf.if %11 {
      %c0_10 = arith.constant 0 : index
      %c0_11 = arith.constant 0 : index
      %12 = vector.load %arg6[%c0_10, %c0_11] : memref<128x128xf32, #tpu.memory_space<vmem>>, vector<128x128xf32>
      %c0_12 = arith.constant 0 : index
      %c0_13 = arith.constant 0 : index
      %13 = vector.load %arg4[%c0_12, %c0_13] : memref<1x128xf32, #tpu.memory_space<vmem>>, vector<1x128xf32>
      %14 = vector.broadcast %13 : vector<1x128xf32> to vector<128x128xf32>
      %15 = arith.addf %12, %14 : vector<128x128xf32>
      %cst_14 = arith.constant 0.000000e+00 : f32
      %16 = vector.broadcast %cst_14 : f32 to vector<128x128xf32>
      %17 = arith.maximumf %15, %16 : vector<128x128xf32>
      %18 = arith.truncf %17 : vector<128x128xf32> to vector<128x128xbf16>
      %c0_15 = arith.constant 0 : index
      %c0_16 = arith.constant 0 : index
      %19 = vector.load %arg5[%c0_15, %c0_16] : memref<128x128xbf16, #tpu.memory_space<vmem>>, vector<128x128xbf16>
      tpu.vector_store %arg5[%c0_15, %c0_16], %18 {strides = array<i32>} : memref<128x128xbf16, #tpu.memory_space<vmem>>, vector<128x128xbf16>,
    } else {
    }
    return
  }
  func.func @transform_0(%arg0: i32, %arg1: i32) -> (i32, i32) {
    %c0_i32 = arith.constant 0 : i32
    return %arg0, %arg1 : i32, i32
  }
  func.func @transform_1(%arg0: i32, %arg1: i32) -> (i32, i32) {
    %c0_i32 = arith.constant 0 : i32
    %c0_i32_0 = arith.constant 0 : i32
    return %arg1, %c0_i32 : i32, i32
  }
  func.func @transform_2(%arg0: i32, %arg1: i32) -> (i32, i32) {
    %c0_i32 = arith.constant 0 : i32
    %c0_i32_0 = arith.constant 0 : i32
    %c0_i32_1 = arith.constant 0 : i32
    return %c0_i32, %c0_i32_0 : i32, i32
  }
  func.func @transform_3(%arg0: i32, %arg1: i32) -> (i32, i32) {
    %c0_i32 = arith.constant 0 : i32
    %c0_i32_0 = arith.constant 0 : i32
    return %arg0, %c0_i32 : i32, i32
  }
}

module attributes {stable_mosaic.version = 11 : i64} {
  func.func @_fused_conv_kernel(%arg0: i32, %arg1: i32, %arg2: memref<128x4xbf16, #tpu.memory_space<vmem>>, %arg3: memref<4x128xbf16, #tpu.memory_space<vmem>>, %arg4: memref<1x128xf32, #tpu.memory_space<vmem>>, %arg5: memref<128x128xf32, #tpu.memory_space<vmem>>, %arg6: memref<128x128xf32, #tpu.memory_space<vmem>>) attributes {dimension_semantics = [#tpu.dimension_semantics<parallel>, #tpu.dimension_semantics<arbitrary>], iteration_bounds = array<i64: 1, 1>, scalar_prefetch = 0 : i64, scratch_operands = 1 : i64, tpu.core_type = #tpu.core_type<tc>, window_params = [{transform_indices = @transform_0, window_bounds = array<i64: 128, 4>}, {transform_indices = @transform_1, window_bounds = array<i64: 4, 128>}, {pipeline_mode = #tpu.pipeline_mode<synchronous>, transform_indices = @transform_2, window_bounds = array<i64: 1, 128>}, {transform_indices = @transform_3, window_bounds = array<i64: 128, 128>}]} {
    %c0_i32 = arith.constant 0 : i32
    %0 = arith.cmpi eq, %arg1, %c0_i32 : i32
    %1 = arith.extui %0 : i1 to i32
    %c0_i32_0 = arith.constant 0 : i32
    %2 = arith.cmpi ne, %1, %c0_i32_0 : i32
    scf.if %2 {
      %cst_10 = arith.constant 0.000000e+00 : f32
      %12 = vector.broadcast %cst_10 : f32 to vector<128x128xf32>
      %c0_11 = arith.constant 0 : index
      %c0_12 = arith.constant 0 : index
      %13 = vector.load %arg6[%c0_11, %c0_12] : memref<128x128xf32, #tpu.memory_space<vmem>>, vector<128x128xf32>
      tpu.vector_store %arg6[%c0_11, %c0_12], %12 {strides = array<i32>} : memref<128x128xf32, #tpu.memory_space<vmem>>, vector<128x128xf32>,
    } else {
    }
    %c0 = arith.constant 0 : index
    %c0_1 = arith.constant 0 : index
    %3 = vector.load %arg6[%c0, %c0_1] : memref<128x128xf32, #tpu.memory_space<vmem>>, vector<128x128xf32>
    %c0_2 = arith.constant 0 : index
    %c0_3 = arith.constant 0 : index
    %4 = vector.load %arg2[%c0_2, %c0_3] : memref<128x4xbf16, #tpu.memory_space<vmem>>, vector<128x4xbf16>
    %c0_4 = arith.constant 0 : index
    %c0_5 = arith.constant 0 : index
    %5 = vector.load %arg3[%c0_4, %c0_5] : memref<4x128xbf16, #tpu.memory_space<vmem>>, vector<4x128xbf16>
    %cst = arith.constant dense<0.000000e+00> : vector<128x128xf32>
    %6 = tpu.matmul %4, %5, %cst {dimension_numbers = #tpu.dot_dimension_numbers<[1], [0], [0], [1], [0, 0, 1, 1], [], []>} : vector<128x4xbf16>, vector<4x128xbf16>, vector<128x128xf32> -> vector<128x128xf32>
    %7 = arith.addf %3, %6 : vector<128x128xf32>
    %c0_6 = arith.constant 0 : index
    %c0_7 = arith.constant 0 : index
    %8 = vector.load %arg6[%c0_6, %c0_7] : memref<128x128xf32, #tpu.memory_space<vmem>>, vector<128x128xf32>
    tpu.vector_store %arg6[%c0_6, %c0_7], %7 {strides = array<i32>} : memref<128x128xf32, #tpu.memory_space<vmem>>, vector<128x128xf32>,
    %c0_i32_8 = arith.constant 0 : i32
    %9 = arith.cmpi eq, %arg1, %c0_i32_8 : i32
    %10 = arith.extui %9 : i1 to i32
    %c0_i32_9 = arith.constant 0 : i32
    %11 = arith.cmpi ne, %10, %c0_i32_9 : i32
    scf.if %11 {
      %c0_10 = arith.constant 0 : index
      %c0_11 = arith.constant 0 : index
      %12 = vector.load %arg6[%c0_10, %c0_11] : memref<128x128xf32, #tpu.memory_space<vmem>>, vector<128x128xf32>
      %c0_12 = arith.constant 0 : index
      %c0_13 = arith.constant 0 : index
      %13 = vector.load %arg4[%c0_12, %c0_13] : memref<1x128xf32, #tpu.memory_space<vmem>>, vector<1x128xf32>
      %14 = vector.broadcast %13 : vector<1x128xf32> to vector<128x128xf32>
      %15 = arith.addf %12, %14 : vector<128x128xf32>
      %c0_14 = arith.constant 0 : index
      %c0_15 = arith.constant 0 : index
      %16 = vector.load %arg5[%c0_14, %c0_15] : memref<128x128xf32, #tpu.memory_space<vmem>>, vector<128x128xf32>
      tpu.vector_store %arg5[%c0_14, %c0_15], %15 {strides = array<i32>} : memref<128x128xf32, #tpu.memory_space<vmem>>, vector<128x128xf32>,
    } else {
    }
    return
  }
  func.func @transform_0(%arg0: i32, %arg1: i32) -> (i32, i32) {
    %c0_i32 = arith.constant 0 : i32
    return %arg0, %arg1 : i32, i32
  }
  func.func @transform_1(%arg0: i32, %arg1: i32) -> (i32, i32) {
    %c0_i32 = arith.constant 0 : i32
    %c0_i32_0 = arith.constant 0 : i32
    return %arg1, %c0_i32 : i32, i32
  }
  func.func @transform_2(%arg0: i32, %arg1: i32) -> (i32, i32) {
    %c0_i32 = arith.constant 0 : i32
    %c0_i32_0 = arith.constant 0 : i32
    %c0_i32_1 = arith.constant 0 : i32
    return %c0_i32, %c0_i32_0 : i32, i32
  }
  func.func @transform_3(%arg0: i32, %arg1: i32) -> (i32, i32) {
    %c0_i32 = arith.constant 0 : i32
    %c0_i32_0 = arith.constant 0 : i32
    return %arg0, %c0_i32 : i32, i32
  }
}

module attributes {stable_mosaic.version = 11 : i64} {
  func.func @_fused_conv_kernel(%arg0: i32, %arg1: i32, %arg2: memref<128x72xbf16, #tpu.memory_space<vmem>>, %arg3: memref<72x128xbf16, #tpu.memory_space<vmem>>, %arg4: memref<1x128xf32, #tpu.memory_space<vmem>>, %arg5: memref<128x128xf32, #tpu.memory_space<vmem>>, %arg6: memref<128x128xf32, #tpu.memory_space<vmem>>, %arg7: memref<128x128xf32, #tpu.memory_space<vmem>>) attributes {dimension_semantics = [#tpu.dimension_semantics<parallel>, #tpu.dimension_semantics<arbitrary>], iteration_bounds = array<i64: 1, 1>, scalar_prefetch = 0 : i64, scratch_operands = 1 : i64, tpu.core_type = #tpu.core_type<tc>, window_params = [{transform_indices = @transform_0, window_bounds = array<i64: 128, 72>}, {transform_indices = @transform_1, window_bounds = array<i64: 72, 128>}, {pipeline_mode = #tpu.pipeline_mode<synchronous>, transform_indices = @transform_2, window_bounds = array<i64: 1, 128>}, {transform_indices = @transform_3, window_bounds = array<i64: 128, 128>}, {transform_indices = @transform_4, window_bounds = array<i64: 128, 128>}]} {
    %c0_i32 = arith.constant 0 : i32
    %0 = arith.cmpi eq, %arg1, %c0_i32 : i32
    %1 = arith.extui %0 : i1 to i32
    %c0_i32_0 = arith.constant 0 : i32
    %2 = arith.cmpi ne, %1, %c0_i32_0 : i32
    scf.if %2 {
      %cst_10 = arith.constant 0.000000e+00 : f32
      %12 = vector.broadcast %cst_10 : f32 to vector<128x128xf32>
      %c0_11 = arith.constant 0 : index
      %c0_12 = arith.constant 0 : index
      %13 = vector.load %arg7[%c0_11, %c0_12] : memref<128x128xf32, #tpu.memory_space<vmem>>, vector<128x128xf32>
      tpu.vector_store %arg7[%c0_11, %c0_12], %12 {strides = array<i32>} : memref<128x128xf32, #tpu.memory_space<vmem>>, vector<128x128xf32>,
    } else {
    }
    %c0 = arith.constant 0 : index
    %c0_1 = arith.constant 0 : index
    %3 = vector.load %arg7[%c0, %c0_1] : memref<128x128xf32, #tpu.memory_space<vmem>>, vector<128x128xf32>
    %c0_2 = arith.constant 0 : index
    %c0_3 = arith.constant 0 : index
    %4 = vector.load %arg2[%c0_2, %c0_3] : memref<128x72xbf16, #tpu.memory_space<vmem>>, vector<128x72xbf16>
    %c0_4 = arith.constant 0 : index
    %c0_5 = arith.constant 0 : index
    %5 = vector.load %arg3[%c0_4, %c0_5] : memref<72x128xbf16, #tpu.memory_space<vmem>>, vector<72x128xbf16>
    %cst = arith.constant dense<0.000000e+00> : vector<128x128xf32>
    %6 = tpu.matmul %4, %5, %cst {dimension_numbers = #tpu.dot_dimension_numbers<[1], [0], [0], [1], [0, 0, 1, 1], [], []>} : vector<128x72xbf16>, vector<72x128xbf16>, vector<128x128xf32> -> vector<128x128xf32>
    %7 = arith.addf %3, %6 : vector<128x128xf32>
    %c0_6 = arith.constant 0 : index
    %c0_7 = arith.constant 0 : index
    %8 = vector.load %arg7[%c0_6, %c0_7] : memref<128x128xf32, #tpu.memory_space<vmem>>, vector<128x128xf32>
    tpu.vector_store %arg7[%c0_6, %c0_7], %7 {strides = array<i32>} : memref<128x128xf32, #tpu.memory_space<vmem>>, vector<128x128xf32>,
    %c0_i32_8 = arith.constant 0 : i32
    %9 = arith.cmpi eq, %arg1, %c0_i32_8 : i32
    %10 = arith.extui %9 : i1 to i32
    %c0_i32_9 = arith.constant 0 : i32
    %11 = arith.cmpi ne, %10, %c0_i32_9 : i32
    scf.if %11 {
      %c0_10 = arith.constant 0 : index
      %c0_11 = arith.constant 0 : index
      %12 = vector.load %arg7[%c0_10, %c0_11] : memref<128x128xf32, #tpu.memory_space<vmem>>, vector<128x128xf32>
      %c0_12 = arith.constant 0 : index
      %c0_13 = arith.constant 0 : index
      %13 = vector.load %arg4[%c0_12, %c0_13] : memref<1x128xf32, #tpu.memory_space<vmem>>, vector<1x128xf32>
      %14 = vector.broadcast %13 : vector<1x128xf32> to vector<128x128xf32>
      %15 = arith.addf %12, %14 : vector<128x128xf32>
      %c0_14 = arith.constant 0 : index
      %c0_15 = arith.constant 0 : index
      %16 = vector.load %arg5[%c0_14, %c0_15] : memref<128x128xf32, #tpu.memory_space<vmem>>, vector<128x128xf32>
      %17 = arith.addf %15, %16 : vector<128x128xf32>
      %cst_16 = arith.constant 0.000000e+00 : f32
      %18 = vector.broadcast %cst_16 : f32 to vector<128x128xf32>
      %19 = arith.maximumf %17, %18 : vector<128x128xf32>
      %c0_17 = arith.constant 0 : index
      %c0_18 = arith.constant 0 : index
      %20 = vector.load %arg6[%c0_17, %c0_18] : memref<128x128xf32, #tpu.memory_space<vmem>>, vector<128x128xf32>
      tpu.vector_store %arg6[%c0_17, %c0_18], %19 {strides = array<i32>} : memref<128x128xf32, #tpu.memory_space<vmem>>, vector<128x128xf32>,
    } else {
    }
    return
  }
  func.func @transform_0(%arg0: i32, %arg1: i32) -> (i32, i32) {
    %c0_i32 = arith.constant 0 : i32
    return %arg0, %arg1 : i32, i32
  }
  func.func @transform_1(%arg0: i32, %arg1: i32) -> (i32, i32) {
    %c0_i32 = arith.constant 0 : i32
    %c0_i32_0 = arith.constant 0 : i32
    return %arg1, %c0_i32 : i32, i32
  }
  func.func @transform_2(%arg0: i32, %arg1: i32) -> (i32, i32) {
    %c0_i32 = arith.constant 0 : i32
    %c0_i32_0 = arith.constant 0 : i32
    %c0_i32_1 = arith.constant 0 : i32
    return %c0_i32, %c0_i32_0 : i32, i32
  }
  func.func @transform_3(%arg0: i32, %arg1: i32) -> (i32, i32) {
    %c0_i32 = arith.constant 0 : i32
    %c0_i32_0 = arith.constant 0 : i32
    return %arg0, %c0_i32 : i32, i32
  }
  func.func @transform_4(%arg0: i32, %arg1: i32) -> (i32, i32) {
    %c0_i32 = arith.constant 0 : i32
    %c0_i32_0 = arith.constant 0 : i32
    return %arg0, %c0_i32 : i32, i32
  }
}

module attributes {stable_mosaic.version = 11 : i64} {
  func.func @_fused_conv_kernel(%arg0: i32, %arg1: i32, %arg2: memref<128x72xbf16, #tpu.memory_space<vmem>>, %arg3: memref<72x128xbf16, #tpu.memory_space<vmem>>, %arg4: memref<1x128xf32, #tpu.memory_space<vmem>>, %arg5: memref<128x128xbf16, #tpu.memory_space<vmem>>, %arg6: memref<128x128xf32, #tpu.memory_space<vmem>>) attributes {dimension_semantics = [#tpu.dimension_semantics<parallel>, #tpu.dimension_semantics<arbitrary>], iteration_bounds = array<i64: 1, 1>, scalar_prefetch = 0 : i64, scratch_operands = 1 : i64, tpu.core_type = #tpu.core_type<tc>, window_params = [{transform_indices = @transform_0, window_bounds = array<i64: 128, 72>}, {transform_indices = @transform_1, window_bounds = array<i64: 72, 128>}, {pipeline_mode = #tpu.pipeline_mode<synchronous>, transform_indices = @transform_2, window_bounds = array<i64: 1, 128>}, {transform_indices = @transform_3, window_bounds = array<i64: 128, 128>}]} {
    %c0_i32 = arith.constant 0 : i32
    %0 = arith.cmpi eq, %arg1, %c0_i32 : i32
    %1 = arith.extui %0 : i1 to i32
    %c0_i32_0 = arith.constant 0 : i32
    %2 = arith.cmpi ne, %1, %c0_i32_0 : i32
    scf.if %2 {
      %cst_10 = arith.constant 0.000000e+00 : f32
      %12 = vector.broadcast %cst_10 : f32 to vector<128x128xf32>
      %c0_11 = arith.constant 0 : index
      %c0_12 = arith.constant 0 : index
      %13 = vector.load %arg6[%c0_11, %c0_12] : memref<128x128xf32, #tpu.memory_space<vmem>>, vector<128x128xf32>
      tpu.vector_store %arg6[%c0_11, %c0_12], %12 {strides = array<i32>} : memref<128x128xf32, #tpu.memory_space<vmem>>, vector<128x128xf32>,
    } else {
    }
    %c0 = arith.constant 0 : index
    %c0_1 = arith.constant 0 : index
    %3 = vector.load %arg6[%c0, %c0_1] : memref<128x128xf32, #tpu.memory_space<vmem>>, vector<128x128xf32>
    %c0_2 = arith.constant 0 : index
    %c0_3 = arith.constant 0 : index
    %4 = vector.load %arg2[%c0_2, %c0_3] : memref<128x72xbf16, #tpu.memory_space<vmem>>, vector<128x72xbf16>
    %c0_4 = arith.constant 0 : index
    %c0_5 = arith.constant 0 : index
    %5 = vector.load %arg3[%c0_4, %c0_5] : memref<72x128xbf16, #tpu.memory_space<vmem>>, vector<72x128xbf16>
    %cst = arith.constant dense<0.000000e+00> : vector<128x128xf32>
    %6 = tpu.matmul %4, %5, %cst {dimension_numbers = #tpu.dot_dimension_numbers<[1], [0], [0], [1], [0, 0, 1, 1], [], []>} : vector<128x72xbf16>, vector<72x128xbf16>, vector<128x128xf32> -> vector<128x128xf32>
    %7 = arith.addf %3, %6 : vector<128x128xf32>
    %c0_6 = arith.constant 0 : index
    %c0_7 = arith.constant 0 : index
    %8 = vector.load %arg6[%c0_6, %c0_7] : memref<128x128xf32, #tpu.memory_space<vmem>>, vector<128x128xf32>
    tpu.vector_store %arg6[%c0_6, %c0_7], %7 {strides = array<i32>} : memref<128x128xf32, #tpu.memory_space<vmem>>, vector<128x128xf32>,
    %c0_i32_8 = arith.constant 0 : i32
    %9 = arith.cmpi eq, %arg1, %c0_i32_8 : i32
    %10 = arith.extui %9 : i1 to i32
    %c0_i32_9 = arith.constant 0 : i32
    %11 = arith.cmpi ne, %10, %c0_i32_9 : i32
    scf.if %11 {
      %c0_10 = arith.constant 0 : index
      %c0_11 = arith.constant 0 : index
      %12 = vector.load %arg6[%c0_10, %c0_11] : memref<128x128xf32, #tpu.memory_space<vmem>>, vector<128x128xf32>
      %c0_12 = arith.constant 0 : index
      %c0_13 = arith.constant 0 : index
      %13 = vector.load %arg4[%c0_12, %c0_13] : memref<1x128xf32, #tpu.memory_space<vmem>>, vector<1x128xf32>
      %14 = vector.broadcast %13 : vector<1x128xf32> to vector<128x128xf32>
      %15 = arith.addf %12, %14 : vector<128x128xf32>
      %cst_14 = arith.constant 0.000000e+00 : f32
      %16 = vector.broadcast %cst_14 : f32 to vector<128x128xf32>
      %17 = arith.maximumf %15, %16 : vector<128x128xf32>
      %18 = arith.truncf %17 : vector<128x128xf32> to vector<128x128xbf16>
      %c0_15 = arith.constant 0 : index
      %c0_16 = arith.constant 0 : index
      %19 = vector.load %arg5[%c0_15, %c0_16] : memref<128x128xbf16, #tpu.memory_space<vmem>>, vector<128x128xbf16>
      tpu.vector_store %arg5[%c0_15, %c0_16], %18 {strides = array<i32>} : memref<128x128xbf16, #tpu.memory_space<vmem>>, vector<128x128xbf16>,
    } else {
    }
    return
  }
  func.func @transform_0(%arg0: i32, %arg1: i32) -> (i32, i32) {
    %c0_i32 = arith.constant 0 : i32
    return %arg0, %arg1 : i32, i32
  }
  func.func @transform_1(%arg0: i32, %arg1: i32) -> (i32, i32) {
    %c0_i32 = arith.constant 0 : i32
    %c0_i32_0 = arith.constant 0 : i32
    return %arg1, %c0_i32 : i32, i32
  }
  func.func @transform_2(%arg0: i32, %arg1: i32) -> (i32, i32) {
    %c0_i32 = arith.constant 0 : i32
    %c0_i32_0 = arith.constant 0 : i32
    %c0_i32_1 = arith.constant 0 : i32
    return %c0_i32, %c0_i32_0 : i32, i32
  }
  func.func @transform_3(%arg0: i32, %arg1: i32) -> (i32, i32) {
    %c0_i32 = arith.constant 0 : i32
    %c0_i32_0 = arith.constant 0 : i32
    return %arg0, %c0_i32 : i32, i32
  }
}

</mosaic_0001>

<bundles_post_ra>
// kernel: resnet_layer_forward.5
= control target key start
LH: loop header
LB: loop body
LE: loop exit
PB: predicated region body
PF: predicated region fallthrough
CT: control target
= control target key end

     0   :  { %vm127_vm0 = vcmask 293888   ;;  %vm152_vm1 = vcmask 1041408   ;;  %s666_s1 = inlined_call_operand.vmem [shape: bf16[36,128], index: 1, kind: input, shape index: {}]   ;;  %s667_s0 = inlined_call_operand.vmem [shape: bf16[128,36], index: 0, kind: input, shape index: {}]   ;;  %s668_s2 = inlined_call_operand.vmem [shape: f32[1,128], index: 2, kind: input, shape index: {}]   ;;  %s669_s3 = inlined_call_operand.vmem [shape: bf16[128,128], index: 3, kind: output, shape index: {}]  }
   0x1   :  { %v567_v0 = vld [vmem:[%s666_s1] sm:$0xff]   ;;  %v568_v1 = vld [vmem:[%s666_s1 + $0x8] sm:$0xff]   ;;  %v569_v2 = vld [vmem:[%s666_s1 + $0x10] ss:$0 sps:$4 sm:$0x33]  }
   0x2   :  { %537 = vmatprep.subr.bf16.mxu0 %v567_v0  ;;  %559 = vmatprep.subr.bf16.mxu1 %v567_v0  ;;  %v570_v3 = vld [vmem:[%s667_s0] sm:$0xff]   ;;  %v154_v5 = vsel %vm152_vm1, %v569_v2, 0  ;;  %v572_v6 = vld [vmem:[%s667_s0 + $0x8] sm:$0xff]   ;;  %v574_v8 = vld [vmem:[%s667_s0 + $0x10] sm:$0xff]  }
   0x3   :  { %538 = vmatpush3.bf16.msra.mxu0 %v567_v0  ;;  %562 = vmatpush3.bf16.msra.mxu1 %v567_v0  ;;  %v571_v4 = vld [vmem:[%s667_s0 + $0x20] sm:$0xff]   ;;  %v573_v7 = vld [vmem:[%s667_s0 + $0x28] sm:$0xff]   ;;  %v575_v9 = vld [vmem:[%s667_s0 + $0x30] sm:$0xff]  }
   0x4   :  { %539 = vmatprep.subr.bf16.mxu0 %v568_v1  ;;  %560 = vmatprep.subr.bf16.mxu1 %v568_v1  ;;  %v576_v10 = vld [vmem:[%s667_s0 + $0x18] sm:$0xff]   ;;  %v446_v12 = vld [vmem:[%s668_s2] ss:$0 sm:$0xff] }
   0x5   :  { %543 = vmatprep.mubr.msk.bf16.mxu0 %vm127_vm0, %v570_v3  ;;  %551 = vmatprep.mubr.msk.bf16.mxu1 %vm127_vm0, %v571_v4  ;;  %v577_v11 = vld [vmem:[%s667_s0 + $0x38] sm:$0xff]  }
   0x7   :  { %540 = vmatpush3.bf16.msra.mxu0 %v568_v1  ;;  %563 = vmatpush3.bf16.msra.mxu1 %v568_v1 }
   0x8   :  { %565 = vmatprep.subr.msk.bf16.mxu0 %vm152_vm1, %v569_v2  ;;  %566 = vmatprep.subr.msk.bf16.mxu1 %vm152_vm1, %v569_v2 }
   0xb   :  { %542 = vmatpush3.bf16.msra.mxu0 %v154_v5  ;;  %564 = vmatpush3.bf16.msra.mxu1 %v154_v5 }
   0xe   :  { %544 = vmatmul.mubr.msk.bf16.vlgmr.msra.gmra.mrb[0].mxu0 %vm127_vm0, %v572_v6  ;;  %552 = vmatmul.mubr.msk.bf16.vlgmr.msra.gmra.mrb[0].mxu1 %vm127_vm0, %v573_v7 }
   0xf   :  { %547 = vmatprep.mubr.msk.bf16.mxu0 %vm127_vm0, %v574_v8  ;;  %555 = vmatprep.mubr.msk.bf16.mxu1 %vm127_vm0, %v575_v9 }
  0x16   :  { %548 = vmatmul.mubr.msk.bf16.gmra.mrb[4].mxu0 %vm127_vm0, %v576_v10  ;;  %556 = vmatmul.mubr.msk.bf16.gmra.mrb[4].mxu1 %vm127_vm0, %v577_v11 }
  0xe1   :  { %v545_v13 = vpop.f32.mrb[0].mxu0  ;;  %v553_v14 = vpop.f32.mrb[0].mxu1 }
  0xe2   :  { %v313_v15 = vadd.f32 %v545_v13, %v446_v12  ;;  %v321_v16 = vadd.f32 %v553_v14, %v446_v12  ;;  %v190_v17 = vpop.f32.mrb[1].mxu0  ;;  %v222_v18 = vpop.f32.mrb[1].mxu1 }
  0xe3   :  { %v311_v19 = vadd.f32 %v446_v12, %v190_v17  ;;  %v319_v20 = vadd.f32 %v446_v12, %v222_v18  ;;  %v546_v21 = vpop.f32.mrb[2].mxu0  ;;  %v554_v22 = vpop.f32.mrb[2].mxu1 }
  0xe4   :  { %v314_v23 = vadd.f32 %v546_v21, %v446_v12  ;;  %v322_v24 = vadd.f32 %v554_v22, %v446_v12  ;;  %v193_v25 = vpop.f32.mrb[3].mxu0  ;;  %v225_v26 = vpop.f32.mrb[3].mxu1  ;;  %v329_v29 = vmax.f32 %v313_v15, 0.0  ;;  %v337_v30 = vmax.f32 %v321_v16, 0.0 }
  0xe5   :  { %v312_v27 = vadd.f32 %v446_v12, %v193_v25  ;;  %v320_v28 = vadd.f32 %v446_v12, %v225_v26  ;;  %v327_v33 = vmax.f32 %v311_v19, 0.0  ;;  %v335_v34 = vmax.f32 %v319_v20, 0.0 }
  0xe6   :  { %v330_v31 = vmax.f32 %v314_v23, 0.0  ;;  %v338_v32 = vmax.f32 %v322_v24, 0.0 }
  0xe7   :  { %v328_v35 = vmax.f32 %v312_v27, 0.0  ;;  %v336_v36 = vmax.f32 %v320_v28, 0.0 }
  0xe8   :  { %v487_v37 = vpack.c.bf16 %v330_v31, %v329_v29  ;;  %v507_v38 = vpack.c.bf16 %v338_v32, %v337_v30 }
  0xe9   :  { %v482_v39 = vpack.c.bf16 %v328_v35, %v327_v33  ;;  %v502_v40 = vpack.c.bf16 %v336_v36, %v335_v34  ;;  %v549_v41 = vpop.f32.mrb[4].mxu0  ;;  %v557_v42 = vpop.f32.mrb[4].mxu1 }
  0xea   :  { %519 = vst [vmem:[%s669_s3 + $0x8] sm:$0xff] %v487_v37   ;;  %523 = vst [vmem:[%s669_s3 + $0x28] sm:$0xff] %v507_v38   ;;  %v317_v43 = vadd.f32 %v549_v41, %v446_v12  ;;  %v325_v44 = vadd.f32 %v557_v42, %v446_v12  ;;  %v206_v45 = vpop.f32.mrb[5].mxu0  ;;  %v238_v46 = vpop.f32.mrb[5].mxu1 }
  0xeb   :  { %483 = vst [vmem:[%s669_s3] sm:$0xff] %v482_v39   ;;  %522 = vst [vmem:[%s669_s3 + $0x20] sm:$0xff] %v502_v40   ;;  %v315_v47 = vadd.f32 %v446_v12, %v206_v45  ;;  %v323_v48 = vadd.f32 %v446_v12, %v238_v46  ;;  %v550_v49 = vpop.f32.mrb[6].mxu0  ;;  %v558_v50 = vpop.f32.mrb[6].mxu1 }
  0xec   :  { %v318_v51 = vadd.f32 %v550_v49, %v446_v12  ;;  %v326_v52 = vadd.f32 %v558_v50, %v446_v12  ;;  %v209_v53 = vpop.f32.mrb[7].mxu0  ;;  %v241_v54 = vpop.f32.mrb[7].mxu1  ;;  %v333_v57 = vmax.f32 %v317_v43, 0.0  ;;  %v341_v58 = vmax.f32 %v325_v44, 0.0 }
  0xed   :  { %v316_v55 = vadd.f32 %v446_v12, %v209_v53  ;;  %v324_v56 = vadd.f32 %v446_v12, %v241_v54  ;;  %v331_v61 = vmax.f32 %v315_v47, 0.0  ;;  %v339_v62 = vmax.f32 %v323_v48, 0.0 }
  0xee   :  { %v334_v59 = vmax.f32 %v318_v51, 0.0  ;;  %v342_v60 = vmax.f32 %v326_v52, 0.0 }
  0xef   :  { %v332_v63 = vmax.f32 %v316_v55, 0.0  ;;  %v340_v0 = vmax.f32 %v324_v56, 0.0 }
  0xf0   :  { %v497_v1 = vpack.c.bf16 %v334_v59, %v333_v57  ;;  %v517_v2 = vpack.c.bf16 %v342_v60, %v341_v58 }
  0xf1   :  { %v492_v3 = vpack.c.bf16 %v332_v63, %v331_v61  ;;  %v512_v4 = vpack.c.bf16 %v340_v0, %v339_v62 }
  0xf2   :  { %521 = vst [vmem:[%s669_s3 + $0x18] sm:$0xff] %v497_v1   ;;  %525 = vst [vmem:[%s669_s3 + $0x38] sm:$0xff] %v517_v2  }
  0xf3   :  { %520 = vst [vmem:[%s669_s3 + $0x10] sm:$0xff] %v492_v3   ;;  %524 = vst [vmem:[%s669_s3 + $0x30] sm:$0xff] %v512_v4  }

// kernel: resnet_layer_forward.6
= control target key start
LH: loop header
LB: loop body
LE: loop exit
PB: predicated region body
PF: predicated region fallthrough
CT: control target
= control target key end

     0   :  { %vm133_vm0 = vcmask 1041408   ;;  %vm108_vm1 = vcmask 31744   ;;  %s490_s1 = inlined_call_operand.vmem [shape: bf16[4,128], index: 1, kind: input, shape index: {}]   ;;  %s491_s0 = inlined_call_operand.vmem [shape: bf16[128,4], index: 0, kind: input, shape index: {}]   ;;  %s492_s2 = inlined_call_operand.vmem [shape: f32[1,128], index: 2, kind: input, shape index: {}]   ;;  %s493_s3 = inlined_call_operand.vmem [shape: f32[128,128], index: 3, kind: output, shape index: {}]  }
   0x1   :  { %v67_v0 = vld [vmem:[%s490_s1] sm:$0x3]  ;;  %v378_v4 = vld [vmem:[%s491_s0 + $0x8] sm:$0xff]   ;;  %v380_v6 = vld [vmem:[%s491_s0 + $0x10] sm:$0xff]  }
   0x2   :  { %374 = vmatprep.subr.msk.bf16.mxu0 %vm133_vm0, %v67_v0  ;;  %375 = vmatprep.subr.msk.bf16.mxu1 %vm133_vm0, %v67_v0  ;;  %v135_v1 = vsel %vm133_vm0, %v67_v0, 0  ;;  %v376_v2 = vld [vmem:[%s491_s0] sm:$0xff]   ;;  %v379_v5 = vld [vmem:[%s491_s0 + $0x28] sm:$0xff]   ;;  %v381_v7 = vld [vmem:[%s491_s0 + $0x30] sm:$0xff]  }
   0x3   :  { %355 = vmatpush3.bf16.msra.mxu0 %v135_v1  ;;  %373 = vmatpush3.bf16.msra.mxu1 %v135_v1  ;;  %v377_v3 = vld [vmem:[%s491_s0 + $0x20] sm:$0xff]   ;;  %v382_v8 = vld [vmem:[%s491_s0 + $0x18] sm:$0xff]  }
   0x4   :  { %356 = vmatprep.mubr.msk.bf16.mxu0 %vm108_vm1, %v376_v2  ;;  %364 = vmatprep.mubr.msk.bf16.mxu1 %vm108_vm1, %v377_v3  ;;  %v383_v9 = vld [vmem:[%s491_s0 + $0x38] sm:$0xff]   ;;  %v344_v10 = vld [vmem:[%s492_s2] ss:$0 sm:$0xff] }
   0x6   :  { %357 = vmatmul.mubr.msk.bf16.vlgmr.msra.gmra.mrb[0].mxu0 %vm108_vm1, %v378_v4  ;;  %365 = vmatmul.mubr.msk.bf16.vlgmr.msra.gmra.mrb[0].mxu1 %vm108_vm1, %v379_v5 }
   0x7   :  { %360 = vmatprep.mubr.msk.bf16.mxu0 %vm108_vm1, %v380_v6  ;;  %368 = vmatprep.mubr.msk.bf16.mxu1 %vm108_vm1, %v381_v7 }
   0xe   :  { %361 = vmatmul.mubr.msk.bf16.gmra.mrb[4].mxu0 %vm108_vm1, %v382_v8  ;;  %369 = vmatmul.mubr.msk.bf16.gmra.mrb[4].mxu1 %vm108_vm1, %v383_v9 }
  0xd9   :  { %v358_v11 = vpop.f32.mrb[0].mxu0  ;;  %v366_v13 = vpop.f32.mrb[0].mxu1 }
  0xda   :  { %v294_v12 = vadd.f32 %v358_v11, %v344_v10  ;;  %v171_v14 = vpop.f32.mrb[1].mxu0  ;;  %v302_v15 = vadd.f32 %v366_v13, %v344_v10  ;;  %v203_v17 = vpop.f32.mrb[1].mxu1 }
  0xdb   :  { %v292_v16 = vadd.f32 %v344_v10, %v171_v14  ;;  %v359_v18 = vpop.f32.mrb[2].mxu0  ;;  %v300_v19 = vadd.f32 %v344_v10, %v203_v17  ;;  %v367_v21 = vpop.f32.mrb[2].mxu1 }
  0xdc   :  { %310 = vst [vmem:[%s493_s3 + $0x10] sm:$0xff] %v294_v12  ;;  %v295_v20 = vadd.f32 %v359_v18, %v344_v10  ;;  %v174_v22 = vpop.f32.mrb[3].mxu0  ;;  %318 = vst [vmem:[%s493_s3 + $0x50] sm:$0xff] %v302_v15  ;;  %v303_v23 = vadd.f32 %v367_v21, %v344_v10  ;;  %v206_v25 = vpop.f32.mrb[3].mxu1 }
  0xdd   :  { %308 = vst [vmem:[%s493_s3] sm:$0xff] %v292_v16  ;;  %v293_v24 = vadd.f32 %v344_v10, %v174_v22  ;;  %316 = vst [vmem:[%s493_s3 + $0x40] sm:$0xff] %v300_v19  ;;  %v301_v26 = vadd.f32 %v344_v10, %v206_v25 }
  0xde   :  { %311 = vst [vmem:[%s493_s3 + $0x18] sm:$0xff] %v295_v20  ;;  %319 = vst [vmem:[%s493_s3 + $0x58] sm:$0xff] %v303_v23 }
  0xdf   :  { %309 = vst [vmem:[%s493_s3 + $0x8] sm:$0xff] %v293_v24  ;;  %317 = vst [vmem:[%s493_s3 + $0x48] sm:$0xff] %v301_v26 }
  0xe1   :  { %v362_v27 = vpop.f32.mrb[4].mxu0  ;;  %v370_v29 = vpop.f32.mrb[4].mxu1 }
  0xe2   :  { %v298_v28 = vadd.f32 %v362_v27, %v344_v10  ;;  %v187_v30 = vpop.f32.mrb[5].mxu0  ;;  %v306_v31 = vadd.f32 %v370_v29, %v344_v10  ;;  %v219_v33 = vpop.f32.mrb[5].mxu1 }
  0xe3   :  { %v296_v32 = vadd.f32 %v344_v10, %v187_v30  ;;  %v363_v34 = vpop.f32.mrb[6].mxu0  ;;  %v304_v35 = vadd.f32 %v344_v10, %v219_v33  ;;  %v371_v37 = vpop.f32.mrb[6].mxu1 }
  0xe4   :  { %314 = vst [vmem:[%s493_s3 + $0x30] sm:$0xff] %v298_v28  ;;  %v299_v36 = vadd.f32 %v363_v34, %v344_v10  ;;  %v190_v38 = vpop.f32.mrb[7].mxu0  ;;  %322 = vst [vmem:[%s493_s3 + $0x70] sm:$0xff] %v306_v31  ;;  %v307_v39 = vadd.f32 %v371_v37, %v344_v10  ;;  %v222_v41 = vpop.f32.mrb[7].mxu1 }
  0xe5   :  { %312 = vst [vmem:[%s493_s3 + $0x20] sm:$0xff] %v296_v32  ;;  %v297_v40 = vadd.f32 %v344_v10, %v190_v38  ;;  %320 = vst [vmem:[%s493_s3 + $0x60] sm:$0xff] %v304_v35  ;;  %v305_v42 = vadd.f32 %v344_v10, %v222_v41 }
  0xe6   :  { %315 = vst [vmem:[%s493_s3 + $0x38] sm:$0xff] %v299_v36  ;;  %323 = vst [vmem:[%s493_s3 + $0x78] sm:$0xff] %v307_v39 }
  0xe7   :  { %313 = vst [vmem:[%s493_s3 + $0x28] sm:$0xff] %v297_v40  ;;  %321 = vst [vmem:[%s493_s3 + $0x68] sm:$0xff] %v305_v42 }

// kernel: resnet_layer_forward.7
= control target key start
LH: loop header
LB: loop body
LE: loop exit
PB: predicated region body
PF: predicated region fallthrough
CT: control target
= control target key end

     0   :  { %vm146_vm0 = vcmask 588800   ;;  %vm171_vm1 = vcmask 1043456   ;;  %s689_s1 = inlined_call_operand.vmem [shape: bf16[72,128], index: 1, kind: input, shape index: {}]   ;;  %s690_s0 = inlined_call_operand.vmem [shape: bf16[128,72], index: 0, kind: input, shape index: {}]   ;;  %s691_s2 = inlined_call_operand.vmem [shape: f32[1,128], index: 2, kind: input, shape index: {}]   ;;  %s692_s3 = inlined_call_operand.vmem [shape: f32[128,128], index: 3, kind: input, shape index: {}]   ;;  %s693_s4 = inlined_call_operand.vmem [shape: f32[128,128], index: 4, kind: output, shape index: {}]  }
   0x1   :  { %v487_v0 = vld [vmem:[%s689_s1] sm:$0xff]   ;;  %v488_v1 = vld [vmem:[%s689_s1 + $0x8] sm:$0xff]   ;;  %v489_v2 = vld [vmem:[%s689_s1 + $0x10] sm:$0xff]  }
   0x2   :  { %449 = vmatprep.subr.bf16.mxu0 %v487_v0  ;;  %475 = vmatprep.subr.bf16.mxu1 %v487_v0  ;;  %v492_v3 = vld [vmem:[%s690_s0] sm:$0xff]   ;;  %v490_v5 = vld [vmem:[%s689_s1 + $0x18] sm:$0xff]   ;;  %v494_v8 = vld [vmem:[%s690_s0 + $0x8] sm:$0xff]  }
   0x3   :  { %450 = vmatpush3.bf16.msra.mxu0 %v487_v0  ;;  %480 = vmatpush3.bf16.msra.mxu1 %v487_v0  ;;  %v493_v4 = vld [vmem:[%s690_s0 + $0x20] sm:$0xff]   ;;  %v495_v9 = vld [vmem:[%s690_s0 + $0x28] sm:$0xff]   ;;  %v496_v10 = vld [vmem:[%s690_s0 + $0x10] sm:$0xff]  }
   0x4   :  { %451 = vmatprep.subr.bf16.mxu0 %v488_v1  ;;  %476 = vmatprep.subr.bf16.mxu1 %v488_v1  ;;  %v491_v6 = vld [vmem:[%s689_s1 + $0x20] ss:$0 sps:$4 sm:$0xff]   ;;  %v497_v11 = vld [vmem:[%s690_s0 + $0x30] sm:$0xff]   ;;  %v498_v12 = vld [vmem:[%s690_s0 + $0x18] sm:$0xff]  }
   0x5   :  { %459 = vmatprep.mubr.msk.bf16.mxu0 %vm146_vm0, %v492_v3  ;;  %467 = vmatprep.mubr.msk.bf16.mxu1 %vm146_vm0, %v493_v4  ;;  %v173_v7 = vsel %vm171_vm1, %v491_v6, 0  ;;  %v499_v13 = vld [vmem:[%s690_s0 + $0x38] sm:$0xff]   ;;  %v575_v14 = vld [vmem:[%s691_s2] ss:$0 sm:$0xff]  ;;  %v348_v16 = vld [vmem:[%s692_s3 + $0x10] sm:$0xff] }
   0x6   :  { %v356_v18 = vld [vmem:[%s692_s3 + $0x50] sm:$0xff]  ;;  %v346_v22 = vld [vmem:[%s692_s3] sm:$0xff]  ;;  %v349_v28 = vld [vmem:[%s692_s3 + $0x18] sm:$0xff] }
   0x7   :  { %452 = vmatpush3.bf16.msra.mxu0 %v488_v1  ;;  %481 = vmatpush3.bf16.msra.mxu1 %v488_v1  ;;  %v354_v24 = vld [vmem:[%s692_s3 + $0x40] sm:$0xff]  ;;  %v357_v30 = vld [vmem:[%s692_s3 + $0x58] sm:$0xff]  ;;  %v347_v36 = vld [vmem:[%s692_s3 + $0x8] sm:$0xff] }
   0x8   :  { %453 = vmatprep.subr.bf16.mxu0 %v489_v2  ;;  %477 = vmatprep.subr.bf16.mxu1 %v489_v2  ;;  %v355_v38 = vld [vmem:[%s692_s3 + $0x48] sm:$0xff]  ;;  %v352_v56 = vld [vmem:[%s692_s3 + $0x30] sm:$0xff]  ;;  %v350_v62 = vld [vmem:[%s692_s3 + $0x20] sm:$0xff] }
   0x9   :  { %v360_v58 = vld [vmem:[%s692_s3 + $0x70] sm:$0xff]  ;;  %v358_v0 = vld [vmem:[%s692_s3 + $0x60] sm:$0xff]  ;;  %v353_v4 = vld [vmem:[%s692_s3 + $0x38] sm:$0xff] }
   0xb   :  { %454 = vmatpush3.bf16.msra.mxu0 %v489_v2  ;;  %482 = vmatpush3.bf16.msra.mxu1 %v489_v2 }
   0xc   :  { %455 = vmatprep.subr.bf16.mxu0 %v490_v5  ;;  %478 = vmatprep.subr.bf16.mxu1 %v490_v5 }
   0xf   :  { %456 = vmatpush3.bf16.msra.mxu0 %v490_v5  ;;  %483 = vmatpush3.bf16.msra.mxu1 %v490_v5 }
  0x10   :  { %485 = vmatprep.subr.msk.bf16.mxu0 %vm171_vm1, %v491_v6  ;;  %486 = vmatprep.subr.msk.bf16.mxu1 %vm171_vm1, %v491_v6  ;;  %v361_v6 = vld [vmem:[%s692_s3 + $0x78] sm:$0xff] }
  0x13   :  { %458 = vmatpush3.bf16.msra.mxu0 %v173_v7  ;;  %484 = vmatpush3.bf16.msra.mxu1 %v173_v7 }
  0x16   :  { %460 = vmatmul.mubr.msk.bf16.vlgmr.msra.gmra.mrb[0].mxu0 %vm146_vm0, %v494_v8  ;;  %468 = vmatmul.mubr.msk.bf16.vlgmr.msra.gmra.mrb[0].mxu1 %vm146_vm0, %v495_v9 }
  0x17   :  { %463 = vmatprep.mubr.msk.bf16.mxu0 %vm146_vm0, %v496_v10  ;;  %471 = vmatprep.mubr.msk.bf16.mxu1 %vm146_vm0, %v497_v11 }
  0x1e   :  { %464 = vmatmul.mubr.msk.bf16.gmra.mrb[4].mxu0 %vm146_vm0, %v498_v12  ;;  %472 = vmatmul.mubr.msk.bf16.gmra.mrb[4].mxu1 %vm146_vm0, %v499_v13  ;;  %v351_v12 = vld [vmem:[%s692_s3 + $0x28] sm:$0xff] }
  0xe9   :  { %v461_v15 = vpop.f32.mrb[0].mxu0  ;;  %v469_v17 = vpop.f32.mrb[0].mxu1 }
  0xea   :  { %v332_v19 = vadd.f32 %v461_v15, %v575_v14  ;;  %v340_v20 = vadd.f32 %v469_v17, %v575_v14  ;;  %v209_v21 = vpop.f32.mrb[1].mxu0  ;;  %v241_v23 = vpop.f32.mrb[1].mxu1  ;;  %v359_v15 = vld [vmem:[%s692_s3 + $0x68] sm:$0xff] }
  0xeb   :  { %v330_v25 = vadd.f32 %v575_v14, %v209_v21  ;;  %v338_v26 = vadd.f32 %v575_v14, %v241_v23  ;;  %v462_v27 = vpop.f32.mrb[2].mxu0  ;;  %v470_v29 = vpop.f32.mrb[2].mxu1 }
  0xec   :  { %v364_v31 = vadd.f32 %v348_v16, %v332_v19  ;;  %v372_v32 = vadd.f32 %v356_v18, %v340_v20  ;;  %v333_v33 = vadd.f32 %v462_v27, %v575_v14  ;;  %v341_v34 = vadd.f32 %v470_v29, %v575_v14  ;;  %v212_v35 = vpop.f32.mrb[3].mxu0  ;;  %v244_v37 = vpop.f32.mrb[3].mxu1 }
  0xed   :  { %v362_v39 = vadd.f32 %v346_v22, %v330_v25  ;;  %v370_v40 = vadd.f32 %v354_v24, %v338_v26  ;;  %v331_v41 = vadd.f32 %v575_v14, %v212_v35  ;;  %v339_v42 = vadd.f32 %v575_v14, %v244_v37 }
  0xee   :  { %v380_v43 = vmax.f32 %v364_v31, 0.0  ;;  %v388_v44 = vmax.f32 %v372_v32, 0.0  ;;  %v365_v45 = vadd.f32 %v349_v28, %v333_v33  ;;  %v373_v46 = vadd.f32 %v357_v30, %v341_v34 }
  0xef   :  { %v378_v47 = vmax.f32 %v362_v39, 0.0  ;;  %v386_v48 = vmax.f32 %v370_v40, 0.0  ;;  %v363_v49 = vadd.f32 %v347_v36, %v331_v41  ;;  %v371_v50 = vadd.f32 %v355_v38, %v339_v42 }
  0xf0   :  { %396 = vst [vmem:[%s693_s4 + $0x10] sm:$0xff] %v380_v43  ;;  %404 = vst [vmem:[%s693_s4 + $0x50] sm:$0xff] %v388_v44  ;;  %v381_v51 = vmax.f32 %v365_v45, 0.0  ;;  %v389_v52 = vmax.f32 %v373_v46, 0.0 }
  0xf1   :  { %394 = vst [vmem:[%s693_s4] sm:$0xff] %v378_v47  ;;  %402 = vst [vmem:[%s693_s4 + $0x40] sm:$0xff] %v386_v48  ;;  %v379_v53 = vmax.f32 %v363_v49, 0.0  ;;  %v387_v54 = vmax.f32 %v371_v50, 0.0  ;;  %v465_v55 = vpop.f32.mrb[4].mxu0  ;;  %v473_v57 = vpop.f32.mrb[4].mxu1 }
  0xf2   :  { %397 = vst [vmem:[%s693_s4 + $0x18] sm:$0xff] %v381_v51  ;;  %405 = vst [vmem:[%s693_s4 + $0x58] sm:$0xff] %v389_v52  ;;  %v336_v59 = vadd.f32 %v465_v55, %v575_v14  ;;  %v344_v60 = vadd.f32 %v473_v57, %v575_v14  ;;  %v225_v61 = vpop.f32.mrb[5].mxu0  ;;  %v257_v63 = vpop.f32.mrb[5].mxu1 }
  0xf3   :  { %395 = vst [vmem:[%s693_s4 + $0x8] sm:$0xff] %v379_v53  ;;  %403 = vst [vmem:[%s693_s4 + $0x48] sm:$0xff] %v387_v54  ;;  %v334_v1 = vadd.f32 %v575_v14, %v225_v61  ;;  %v342_v2 = vadd.f32 %v575_v14, %v257_v63  ;;  %v466_v3 = vpop.f32.mrb[6].mxu0  ;;  %v474_v5 = vpop.f32.mrb[6].mxu1 }
  0xf4   :  { %v368_v7 = vadd.f32 %v352_v56, %v336_v59  ;;  %v376_v8 = vadd.f32 %v360_v58, %v344_v60  ;;  %v337_v9 = vadd.f32 %v466_v3, %v575_v14  ;;  %v345_v10 = vadd.f32 %v474_v5, %v575_v14  ;;  %v228_v11 = vpop.f32.mrb[7].mxu0  ;;  %v260_v13 = vpop.f32.mrb[7].mxu1 }
  0xf5   :  { %v366_v16 = vadd.f32 %v350_v62, %v334_v1  ;;  %v374_v17 = vadd.f32 %v358_v0, %v342_v2  ;;  %v335_v18 = vadd.f32 %v575_v14, %v228_v11  ;;  %v343_v19 = vadd.f32 %v575_v14, %v260_v13 }
  0xf6   :  { %v384_v20 = vmax.f32 %v368_v7, 0.0  ;;  %v392_v21 = vmax.f32 %v376_v8, 0.0  ;;  %v369_v22 = vadd.f32 %v353_v4, %v337_v9  ;;  %v377_v23 = vadd.f32 %v361_v6, %v345_v10 }
  0xf7   :  { %v382_v24 = vmax.f32 %v366_v16, 0.0  ;;  %v390_v25 = vmax.f32 %v374_v17, 0.0  ;;  %v367_v26 = vadd.f32 %v351_v12, %v335_v18  ;;  %v375_v27 = vadd.f32 %v359_v15, %v343_v19 }
  0xf8   :  { %400 = vst [vmem:[%s693_s4 + $0x30] sm:$0xff] %v384_v20  ;;  %408 = vst [vmem:[%s693_s4 + $0x70] sm:$0xff] %v392_v21  ;;  %v385_v28 = vmax.f32 %v369_v22, 0.0  ;;  %v393_v29 = vmax.f32 %v377_v23, 0.0 }
  0xf9   :  { %398 = vst [vmem:[%s693_s4 + $0x20] sm:$0xff] %v382_v24  ;;  %406 = vst [vmem:[%s693_s4 + $0x60] sm:$0xff] %v390_v25  ;;  %v383_v14 = vmax.f32 %v367_v26, 0.0  ;;  %v391_v30 = vmax.f32 %v375_v27, 0.0 }
  0xfa   :  { %401 = vst [vmem:[%s693_s4 + $0x38] sm:$0xff] %v385_v28  ;;  %409 = vst [vmem:[%s693_s4 + $0x78] sm:$0xff] %v393_v29 }
  0xfb   :  { %399 = vst [vmem:[%s693_s4 + $0x28] sm:$0xff] %v383_v14  ;;  %407 = vst [vmem:[%s693_s4 + $0x68] sm:$0xff] %v391_v30 }

// kernel: resnet_layer_forward.8
= control target key start
LH: loop header
LB: loop body
LE: loop exit
PB: predicated region body
PF: predicated region fallthrough
CT: control target
= control target key end

     0   :  { %vm143_vm0 = vcmask 588800   ;;  %vm168_vm1 = vcmask 1043456   ;;  %s702_s1 = inlined_call_operand.vmem [shape: bf16[72,128], index: 1, kind: input, shape index: {}]   ;;  %s703_s0 = inlined_call_operand.vmem [shape: bf16[128,72], index: 0, kind: input, shape index: {}]   ;;  %s704_s2 = inlined_call_operand.vmem [shape: f32[1,128], index: 2, kind: input, shape index: {}]   ;;  %s705_s3 = inlined_call_operand.vmem [shape: bf16[128,128], index: 3, kind: output, shape index: {}]  }
   0x1   :  { %v595_v0 = vld [vmem:[%s702_s1] sm:$0xff]   ;;  %v596_v1 = vld [vmem:[%s702_s1 + $0x8] sm:$0xff]   ;;  %v597_v2 = vld [vmem:[%s702_s1 + $0x10] sm:$0xff]  }
   0x2   :  { %557 = vmatprep.subr.bf16.mxu0 %v595_v0  ;;  %583 = vmatprep.subr.bf16.mxu1 %v595_v0  ;;  %v600_v3 = vld [vmem:[%s703_s0] sm:$0xff]   ;;  %v598_v5 = vld [vmem:[%s702_s1 + $0x18] sm:$0xff]   ;;  %v602_v8 = vld [vmem:[%s703_s0 + $0x8] sm:$0xff]  }
   0x3   :  { %558 = vmatpush3.bf16.msra.mxu0 %v595_v0  ;;  %588 = vmatpush3.bf16.msra.mxu1 %v595_v0  ;;  %v601_v4 = vld [vmem:[%s703_s0 + $0x20] sm:$0xff]   ;;  %v603_v9 = vld [vmem:[%s703_s0 + $0x28] sm:$0xff]   ;;  %v604_v10 = vld [vmem:[%s703_s0 + $0x10] sm:$0xff]  }
   0x4   :  { %559 = vmatprep.subr.bf16.mxu0 %v596_v1  ;;  %584 = vmatprep.subr.bf16.mxu1 %v596_v1  ;;  %v599_v6 = vld [vmem:[%s702_s1 + $0x20] ss:$0 sps:$4 sm:$0xff]   ;;  %v605_v11 = vld [vmem:[%s703_s0 + $0x30] sm:$0xff]   ;;  %v606_v12 = vld [vmem:[%s703_s0 + $0x18] sm:$0xff]  }
   0x5   :  { %567 = vmatprep.mubr.msk.bf16.mxu0 %vm143_vm0, %v600_v3  ;;  %575 = vmatprep.mubr.msk.bf16.mxu1 %vm143_vm0, %v601_v4  ;;  %v170_v7 = vsel %vm168_vm1, %v599_v6, 0  ;;  %v607_v13 = vld [vmem:[%s703_s0 + $0x38] sm:$0xff]   ;;  %v464_v14 = vld [vmem:[%s704_s2] ss:$0 sm:$0xff] }
   0x7   :  { %560 = vmatpush3.bf16.msra.mxu0 %v596_v1  ;;  %589 = vmatpush3.bf16.msra.mxu1 %v596_v1 }
   0x8   :  { %561 = vmatprep.subr.bf16.mxu0 %v597_v2  ;;  %585 = vmatprep.subr.bf16.mxu1 %v597_v2 }
   0xb   :  { %562 = vmatpush3.bf16.msra.mxu0 %v597_v2  ;;  %590 = vmatpush3.bf16.msra.mxu1 %v597_v2 }
   0xc   :  { %563 = vmatprep.subr.bf16.mxu0 %v598_v5  ;;  %586 = vmatprep.subr.bf16.mxu1 %v598_v5 }
   0xf   :  { %564 = vmatpush3.bf16.msra.mxu0 %v598_v5  ;;  %591 = vmatpush3.bf16.msra.mxu1 %v598_v5 }
  0x10   :  { %593 = vmatprep.subr.msk.bf16.mxu0 %vm168_vm1, %v599_v6  ;;  %594 = vmatprep.subr.msk.bf16.mxu1 %vm168_vm1, %v599_v6 }
  0x13   :  { %566 = vmatpush3.bf16.msra.mxu0 %v170_v7  ;;  %592 = vmatpush3.bf16.msra.mxu1 %v170_v7 }
  0x16   :  { %568 = vmatmul.mubr.msk.bf16.vlgmr.msra.gmra.mrb[0].mxu0 %vm143_vm0, %v602_v8  ;;  %576 = vmatmul.mubr.msk.bf16.vlgmr.msra.gmra.mrb[0].mxu1 %vm143_vm0, %v603_v9 }
  0x17   :  { %571 = vmatprep.mubr.msk.bf16.mxu0 %vm143_vm0, %v604_v10  ;;  %579 = vmatprep.mubr.msk.bf16.mxu1 %vm143_vm0, %v605_v11 }
  0x1e   :  { %572 = vmatmul.mubr.msk.bf16.gmra.mrb[4].mxu0 %vm143_vm0, %v606_v12  ;;  %580 = vmatmul.mubr.msk.bf16.gmra.mrb[4].mxu1 %vm143_vm0, %v607_v13 }
  0xe9   :  { %v569_v15 = vpop.f32.mrb[0].mxu0  ;;  %v577_v16 = vpop.f32.mrb[0].mxu1 }
  0xea   :  { %v329_v17 = vadd.f32 %v569_v15, %v464_v14  ;;  %v337_v18 = vadd.f32 %v577_v16, %v464_v14  ;;  %v206_v19 = vpop.f32.mrb[1].mxu0  ;;  %v238_v20 = vpop.f32.mrb[1].mxu1 }
  0xeb   :  { %v327_v21 = vadd.f32 %v464_v14, %v206_v19  ;;  %v335_v22 = vadd.f32 %v464_v14, %v238_v20  ;;  %v570_v23 = vpop.f32.mrb[2].mxu0  ;;  %v578_v24 = vpop.f32.mrb[2].mxu1 }
  0xec   :  { %v330_v25 = vadd.f32 %v570_v23, %v464_v14  ;;  %v338_v26 = vadd.f32 %v578_v24, %v464_v14  ;;  %v209_v27 = vpop.f32.mrb[3].mxu0  ;;  %v241_v28 = vpop.f32.mrb[3].mxu1  ;;  %v345_v31 = vmax.f32 %v329_v17, 0.0  ;;  %v353_v32 = vmax.f32 %v337_v18, 0.0 }
  0xed   :  { %v328_v29 = vadd.f32 %v464_v14, %v209_v27  ;;  %v336_v30 = vadd.f32 %v464_v14, %v241_v28  ;;  %v343_v35 = vmax.f32 %v327_v21, 0.0  ;;  %v351_v36 = vmax.f32 %v335_v22, 0.0 }
  0xee   :  { %v346_v33 = vmax.f32 %v330_v25, 0.0  ;;  %v354_v34 = vmax.f32 %v338_v26, 0.0 }
  0xef   :  { %v344_v37 = vmax.f32 %v328_v29, 0.0  ;;  %v352_v38 = vmax.f32 %v336_v30, 0.0 }
  0xf0   :  { %v505_v39 = vpack.c.bf16 %v346_v33, %v345_v31  ;;  %v525_v40 = vpack.c.bf16 %v354_v34, %v353_v32 }
  0xf1   :  { %v500_v41 = vpack.c.bf16 %v344_v37, %v343_v35  ;;  %v520_v42 = vpack.c.bf16 %v352_v38, %v351_v36  ;;  %v573_v43 = vpop.f32.mrb[4].mxu0  ;;  %v581_v44 = vpop.f32.mrb[4].mxu1 }
  0xf2   :  { %537 = vst [vmem:[%s705_s3 + $0x8] sm:$0xff] %v505_v39   ;;  %541 = vst [vmem:[%s705_s3 + $0x28] sm:$0xff] %v525_v40   ;;  %v333_v45 = vadd.f32 %v573_v43, %v464_v14  ;;  %v341_v46 = vadd.f32 %v581_v44, %v464_v14  ;;  %v222_v47 = vpop.f32.mrb[5].mxu0  ;;  %v254_v48 = vpop.f32.mrb[5].mxu1 }
  0xf3   :  { %501 = vst [vmem:[%s705_s3] sm:$0xff] %v500_v41   ;;  %540 = vst [vmem:[%s705_s3 + $0x20] sm:$0xff] %v520_v42   ;;  %v331_v49 = vadd.f32 %v464_v14, %v222_v47  ;;  %v339_v50 = vadd.f32 %v464_v14, %v254_v48  ;;  %v574_v51 = vpop.f32.mrb[6].mxu0  ;;  %v582_v52 = vpop.f32.mrb[6].mxu1 }
  0xf4   :  { %v334_v53 = vadd.f32 %v574_v51, %v464_v14  ;;  %v342_v54 = vadd.f32 %v582_v52, %v464_v14  ;;  %v225_v55 = vpop.f32.mrb[7].mxu0  ;;  %v257_v56 = vpop.f32.mrb[7].mxu1  ;;  %v349_v59 = vmax.f32 %v333_v45, 0.0  ;;  %v357_v60 = vmax.f32 %v341_v46, 0.0 }
  0xf5   :  { %v332_v57 = vadd.f32 %v464_v14, %v225_v55  ;;  %v340_v58 = vadd.f32 %v464_v14, %v257_v56  ;;  %v347_v63 = vmax.f32 %v331_v49, 0.0  ;;  %v355_v0 = vmax.f32 %v339_v50, 0.0 }
  0xf6   :  { %v350_v61 = vmax.f32 %v334_v53, 0.0  ;;  %v358_v62 = vmax.f32 %v342_v54, 0.0 }
  0xf7   :  { %v348_v1 = vmax.f32 %v332_v57, 0.0  ;;  %v356_v2 = vmax.f32 %v340_v58, 0.0 }
  0xf8   :  { %v515_v3 = vpack.c.bf16 %v350_v61, %v349_v59  ;;  %v535_v4 = vpack.c.bf16 %v358_v62, %v357_v60 }
  0xf9   :  { %v510_v5 = vpack.c.bf16 %v348_v1, %v347_v63  ;;  %v530_v6 = vpack.c.bf16 %v356_v2, %v355_v0 }
  0xfa   :  { %539 = vst [vmem:[%s705_s3 + $0x18] sm:$0xff] %v515_v3   ;;  %543 = vst [vmem:[%s705_s3 + $0x38] sm:$0xff] %v535_v4  }
  0xfb   :  { %538 = vst [vmem:[%s705_s3 + $0x10] sm:$0xff] %v510_v5   ;;  %542 = vst [vmem:[%s705_s3 + $0x30] sm:$0xff] %v530_v6  }

</bundles_post_ra>
